<compile_context>
chip_gen: v7x
topology: tpu7x:2x2x1
jax: 0.10.0
libtpu: 0.0.40
codegen_flags: <defaults>
</compile_context>

<pallas_src>
import functools

import jax
import jax.numpy as jnp
from jax import lax
from jax.experimental import pallas as pl
from jax.experimental.pallas import tpu as pltpu

EPS = 1e-5


def _basic_block_kernel(x_ref, y_ref, w1_ref, w2_ref, p_ref, s1_ref, s2_ref,
                        sm_ref, outx_ref, outy_ref, *, H, inv_count):
    """All activations live in the folded (N*H, W*C) lane-dense layout."""
    f32 = jnp.float32
    bf16 = jnp.bfloat16
    NH, L = x_ref.shape

    x = x_ref[...]
    y = y_ref[...]
    p = p_ref[...]                       # (L, L) channel-selection matrix

    # Row -> height masks realising SAME padding in H (shared by both convs).
    # The wrap-around rows of the rolls below land only on rows these masks
    # zero out; this holds because the whole slab (all of H) is one block.
    h_idx = lax.broadcasted_iota(jnp.int32, (NH, L), 0) % H
    not_top = h_idx != 0            # row h-1 exists
    not_bot = h_idx != (H - 1)      # row h+1 exists

    def bn_relu(t, s_ref):
        # Training-mode BatchNorm (batch stats, biased variance) + ReLU.
        # Single pass: sum / sum-of-squares stacked into ONE (2, L) matrix and
        # folded per channel (and broadcast back over all W positions) with a
        # single tiny matmul against p.  Stats stay f32 (E[x^2]-E[x]^2 is
        # cancellation-prone; do not feed bf16 here).
        # TODO(synk): at large W*C replace the (L, L) p matmul with a
        # log2(W)-step lane-roll tree (pltpu.roll by C*2^k) so p never touches
        # VMEM; and at real ResNet scale switch to a two-phase (stats / apply)
        # BN over a row-block grid.
        stats = jnp.concatenate(
            [jnp.sum(t, axis=0, keepdims=True),
             jnp.sum(t * t, axis=0, keepdims=True)], axis=0)          # (2, L)
        folded = jnp.dot(stats, p, preferred_element_type=f32) * inv_count
        mean = folded[0:1, :]
        var = folded[1:2, :] - mean * mean
        scale = s_ref[0:1, :] * lax.rsqrt(var + EPS)   # gamma * rsqrt(var+eps)
        shift = s_ref[1:2, :] - mean * scale           # beta - mean*scale
        return jnp.maximum(t * scale + shift, 0.0)

    def conv3x3(t, w_ref):
        # 3x3 SAME conv as ONE K=3L MXU matmul (bf16 operands, f32 accumulate):
        #   * dy = -1/+1 taps: XLU row-rolls + boundary masks (padding in H),
        #   * dx taps + padding in W: baked into the (3L, L) banded weight.
        t_up = jnp.where(not_top, pltpu.roll(t, 1, 0), 0.0)        # x at h-1
        t_dn = jnp.where(not_bot, pltpu.roll(t, NH - 1, 0), 0.0)   # x at h+1
        t3 = jnp.concatenate(
            [t_up.astype(bf16), t.astype(bf16), t_dn.astype(bf16)], axis=1)
        return jnp.dot(t3, w_ref[...], preferred_element_type=f32)

    out = conv3x3(bn_relu(x, s1_ref), w1_ref)
    out = conv3x3(bn_relu(out, s2_ref), w2_ref)

    # Momentum update (downsample is None => residuals are the raw inputs);
    # learned scalars read once from SMEM.
    step = sm_ref[0]
    mom = sm_ref[1]
    outy = x - step * out
    outx = (1.0 + mom) * outy - mom * y
    outy_ref[...] = outy.astype(outy_ref.dtype)
    outx_ref[...] = outx.astype(outx_ref.dtype)


def _banded_conv_weights(w_oihw, W):
    """OIHW 3x3 weight -> (3*W*Cin, W*Cout) block-banded bf16 matrix.

    Block dy satisfies
      B[dy, w_in*Cin + ci, w_out*Cout + co] = w_hwio[dy, w_in - w_out + 1, ci, co]
    when |w_in - w_out| <= 1, else 0 (which also realises SAME padding in W).
    The three dy blocks are stacked along K so that one (NH, 3L) @ (3L, L)
    matmul performs the whole conv.
    TODO(synk): at large W*C the banded matrix is ~97% zeros; switch to 9
    per-(dy,dx) (Cin, Cout) weights applied via lane rolls by +/-C instead.
    """
    w = jnp.transpose(w_oihw, (2, 3, 1, 0)).astype(jnp.float32)   # HWIO (3,3,Ci,Co)
    _, _, cin, cout = w.shape
    w_in = jnp.arange(W)[:, None]
    w_out = jnp.arange(W)[None, :]
    dx = w_in - w_out + 1                                         # (W, W)
    valid = ((dx >= 0) & (dx <= 2)).astype(jnp.float32)
    blocks = w[:, jnp.clip(dx, 0, 2)]                             # (3, W, W, Ci, Co)
    blocks = blocks * valid[None, :, :, None, None]
    banded = jnp.transpose(blocks, (0, 1, 3, 2, 4)).reshape(3 * W * cin, W * cout)
    return banded.astype(jnp.bfloat16)


def _channel_sum_matrix(W, C):
    """(W*C, W*C) with P[i,j] = 1 iff lanes i and j hold the same channel.
    stats @ P = per-channel totals, already broadcast over all W positions."""
    lane = jnp.arange(W * C)
    return (lane[:, None] % C == lane[None, :] % C).astype(jnp.float32)


def prepare_block_params(params, W):
    """One-time packing of module parameters into kernel-ready operands.

    Hoisted out of the per-step forward so the per-call graph is just the
    activation transposes + the pallas_call."""
    C = params["conv1_w"].shape[1]
    assert params["conv1_w"].shape[0] == C, "downsample=None requires planes == inplanes"
    s1 = jnp.stack([jnp.tile(params["bn1_gamma"].astype(jnp.float32), W),
                    jnp.tile(params["bn1_beta"].astype(jnp.float32), W)])
    s2 = jnp.stack([jnp.tile(params["bn2_gamma"].astype(jnp.float32), W),
                    jnp.tile(params["bn2_beta"].astype(jnp.float32), W)])
    return {
        "w1": _banded_conv_weights(params["conv1_w"], W),
        "w2": _banded_conv_weights(params["conv2_w"], W),
        "p": _channel_sum_matrix(W, C),
        "s1": s1,
        "s2": s2,
        "sm": jnp.stack([params["step_size"], params["momentum"]]).astype(jnp.float32),
    }


def basic_block_forward_folded(x2d, y2d, prep, *, H, bn_count):
    """Core Pallas call on activations already in the folded (N*H, W*C) layout."""
    NH, L = x2d.shape
    kernel = functools.partial(_basic_block_kernel, H=H, inv_count=1.0 / bn_count)
    vmem = pl.BlockSpec(memory_space=pltpu.MemorySpace.VMEM)
    smem = pl.BlockSpec(memory_space=pltpu.MemorySpace.SMEM)

    # TODO(synk): at real ResNet scale add a grid over NH row-blocks (block
    # height a multiple of H so the roll wrap-around stays on masked rows),
    # dimension_semantics=("parallel",), a two-phase BN, pl.Buffered(2-3) on
    # the activation inputs, and per-generation vmem_limit_bytes (v7x has only
    # 64 MiB VMEM; v5e's scoped default is 16 MiB).
    outx, outy = pl.pallas_call(
        kernel,
        out_shape=(
            jax.ShapeDtypeStruct((NH, L), jnp.float32),
            jax.ShapeDtypeStruct((NH, L), jnp.float32),
        ),
        in_specs=[vmem, vmem, vmem, vmem, vmem, vmem, vmem, smem],
        out_specs=(vmem, vmem),
    )(x2d, y2d, prep["w1"], prep["w2"], prep["p"], prep["s1"], prep["s2"], prep["sm"])
    return outx, outy


@jax.jit
def basic_block_forward(x_nchw, y_nchw, prep):
    """NCHW in/out shim for PyTorch parity.

    NOTE: the NCHW<->folded transposes exist only for parity with the PyTorch
    module; a production caller should keep activations in the folded
    (N*H, W*C) layout and call basic_block_forward_folded directly.
    """
    N, C, H, W = x_nchw.shape
    x2d = jnp.transpose(x_nchw, (0, 2, 3, 1)).astype(jnp.float32).reshape(N * H, W * C)
    y2d = jnp.transpose(y_nchw, (0, 2, 3, 1)).astype(jnp.float32).reshape(N * H, W * C)

    outx2d, outy2d = basic_block_forward_folded(
        x2d, y2d, prep, H=H, bn_count=N * H * W)

    outx = jnp.transpose(outx2d.reshape(N, H, W, C), (0, 3, 1, 2))
    outy = jnp.transpose(outy2d.reshape(N, H, W, C), (0, 3, 1, 2))
    return outx, outy


def reference_forward(x, y, params):
    """Pure-JAX f32 reference (NCHW) for validation."""
    def bn(t, g, b):
        mean = t.mean(axis=(0, 2, 3), keepdims=True)
        var = ((t - mean) ** 2).mean(axis=(0, 2, 3), keepdims=True)
        return (t - mean) / jnp.sqrt(var + EPS) * g.reshape(1, -1, 1, 1) + b.reshape(1, -1, 1, 1)

    def conv(t, w):
        return lax.conv_general_dilated(
            t, w, window_strides=(1, 1), padding="SAME",
            dimension_numbers=("NCHW", "OIHW", "NCHW"),
            precision=lax.Precision.HIGHEST)

    out = jnp.maximum(bn(x, params["bn1_gamma"], params["bn1_beta"]), 0.0)
    out = conv(out, params["conv1_w"])
    out = jnp.maximum(bn(out, params["bn2_gamma"], params["bn2_beta"]), 0.0)
    out = conv(out, params["conv2_w"])
    outy = x - params["step_size"] * out
    outx = (1.0 + params["momentum"]) * outy - params["momentum"] * y
    return outx, outy


if __name__ == "__main__":
    # Small shapes consistent with the module: batch=2, inplanes=planes=8, 16x16.
    # (W*C = 128, so the folded lane dim is exactly one full vreg width.)
    N, C, H, W = 2, 8, 16, 16
    inplanes = planes = C

    key = jax.random.PRNGKey(0)
    ks = jax.random.split(key, 8)

    params = {
        "conv1_w": jax.random.normal(ks[0], (planes, inplanes, 3, 3), jnp.float32) * 0.1,
        "conv2_w": jax.random.normal(ks[1], (planes, planes, 3, 3), jnp.float32) * 0.1,
        "bn1_gamma": 1.0 + 0.1 * jax.random.normal(ks[2], (inplanes,), jnp.float32),
        "bn1_beta": 0.1 * jax.random.normal(ks[3], (inplanes,), jnp.float32),
        "bn2_gamma": 1.0 + 0.1 * jax.random.normal(ks[4], (planes,), jnp.float32),
        "bn2_beta": 0.1 * jax.random.normal(ks[5], (planes,), jnp.float32),
        "step_size": jnp.float32(2.0),
        "momentum": jnp.float32(0.5),
    }

    x = jax.random.normal(ks[6], (N, C, H, W), jnp.float32)
    y = jax.random.normal(ks[7], (N, C, H, W), jnp.float32)

    prep = prepare_block_params(params, W)        # one-time weight packing
    outx, outy = basic_block_forward(x, y, prep)
    jax.block_until_ready((outx, outy))

    ref_x, ref_y = reference_forward(x, y, params)
    assert outx.shape == (N, C, H, W) and outy.shape == (N, C, H, W)
    # Looser tolerance than v1: conv operands are bf16 on the MXU (f32
    # accumulation) while the reference is pure f32.
    assert jnp.allclose(outx, ref_x, atol=5e-2, rtol=5e-2)
    assert jnp.allclose(outy, ref_y, atol=5e-2, rtol=5e-2)

    print("KERNEL_OK")
</pallas_src>

<mosaic_0001>
module attributes {stable_mosaic.version = 11 : i64} {
  func.func @_basic_block_kernel(%arg0: memref<32x128xf32, #tpu.memory_space<vmem>>, %arg1: memref<32x128xf32, #tpu.memory_space<vmem>>, %arg2: memref<384x128xbf16, #tpu.memory_space<vmem>>, %arg3: memref<384x128xbf16, #tpu.memory_space<vmem>>, %arg4: memref<128x128xf32, #tpu.memory_space<vmem>>, %arg5: memref<2x128xf32, #tpu.memory_space<vmem>>, %arg6: memref<2x128xf32, #tpu.memory_space<vmem>>, %arg7: memref<2xf32, #tpu.memory_space<smem>>, %arg8: memref<32x128xf32, #tpu.memory_space<vmem>>, %arg9: memref<32x128xf32, #tpu.memory_space<vmem>>) attributes {dimension_semantics = [], scalar_prefetch = 0 : i64, scratch_operands = 0 : i64, tpu.core_type = #tpu.core_type<tc>} {
    %c0 = arith.constant 0 : index
    %c0_0 = arith.constant 0 : index
    %0 = vector.load %arg0[%c0, %c0_0] : memref<32x128xf32, #tpu.memory_space<vmem>>, vector<32x128xf32>
    %c0_1 = arith.constant 0 : index
    %c0_2 = arith.constant 0 : index
    %1 = vector.load %arg1[%c0_1, %c0_2] : memref<32x128xf32, #tpu.memory_space<vmem>>, vector<32x128xf32>
    %c0_3 = arith.constant 0 : index
    %c0_4 = arith.constant 0 : index
    %2 = vector.load %arg4[%c0_3, %c0_4] : memref<128x128xf32, #tpu.memory_space<vmem>>, vector<128x128xf32>
    %3 = tpu.iota {dimensions = array<i32: 0>} : vector<32x128xi32>
    %c16_i32 = arith.constant 16 : i32
    %c0_i32 = arith.constant 0 : i32
    %4 = arith.cmpi eq, %c16_i32, %c0_i32 : i32
    %c1_i32 = arith.constant 1 : i32
    %5 = arith.select %4, %c1_i32, %c16_i32 : i32
    %6 = vector.broadcast %5 : i32 to vector<32x128xi32>
    %7 = arith.remsi %3, %6 : vector<32x128xi32>
    %c0_i32_5 = arith.constant 0 : i32
    %8 = vector.broadcast %c0_i32_5 : i32 to vector<32x128xi32>
    %9 = arith.cmpi ne, %7, %8 : vector<32x128xi32>
    %c0_i32_6 = arith.constant 0 : i32
    %10 = vector.broadcast %c0_i32_6 : i32 to vector<32x128xi32>
    %11 = arith.cmpi slt, %7, %10 : vector<32x128xi32>
    %c0_i32_7 = arith.constant 0 : i32
    %12 = arith.cmpi slt, %5, %c0_i32_7 : i32
    %13 = vector.broadcast %12 : i1 to vector<32x128xi1>
    %14 = vector.broadcast %13 : vector<32x128xi1> to vector<32x128xi1>
    %15 = arith.xori %11, %14 : vector<32x128xi1>
    %16 = arith.andi %15, %9 : vector<32x128xi1>
    %17 = vector.broadcast %5 : i32 to vector<32x128xi32>
    %18 = arith.addi %7, %17 : vector<32x128xi32>
    %19 = arith.select %16, %18, %7 : vector<32x128xi1>, vector<32x128xi32>
    %c0_i32_8 = arith.constant 0 : i32
    %20 = vector.broadcast %c0_i32_8 : i32 to vector<32x128xi32>
    %21 = arith.cmpi ne, %19, %20 : vector<32x128xi32>
    %c15_i32 = arith.constant 15 : i32
    %22 = vector.broadcast %c15_i32 : i32 to vector<32x128xi32>
    %23 = arith.cmpi ne, %19, %22 : vector<32x128xi32>
    %cst = arith.constant dense<0.000000e+00> : vector<128xf32>
    %24 = vector.multi_reduction <add>, %0, %cst [0] : vector<32x128xf32> to vector<128xf32>
    %25 = vector.shape_cast %24 : vector<128xf32> to vector<1x128xf32>
    %26 = arith.mulf %0, %0 : vector<32x128xf32>
    %cst_9 = arith.constant dense<0.000000e+00> : vector<128xf32>
    %27 = vector.multi_reduction <add>, %26, %cst_9 [0] : vector<32x128xf32> to vector<128xf32>
    %28 = vector.shape_cast %27 : vector<128xf32> to vector<1x128xf32>
    %29 = tpu.concatenate %25, %28 in 0 : vector<1x128xf32>, vector<1x128xf32> -> vector<2x128xf32>
    %cst_10 = arith.constant dense<0.000000e+00> : vector<2x128xf32>
    %30 = tpu.matmul %29, %2, %cst_10 {dimension_numbers = #tpu.dot_dimension_numbers<[1], [0], [0], [1], [0, 0, 1, 1], [], []>} : vector<2x128xf32>, vector<128x128xf32>, vector<2x128xf32> -> vector<2x128xf32>
    %cst_11 = arith.constant 0.001953125 : f32
    %31 = vector.broadcast %cst_11 : f32 to vector<2x128xf32>
    %32 = arith.mulf %30, %31 : vector<2x128xf32>
    %33 = vector.extract_strided_slice %32 {offsets = [0, 0], sizes = [1, 128], strides = [1, 1]} : vector<2x128xf32> to vector<1x128xf32>
    %34 = vector.extract_strided_slice %32 {offsets = [1, 0], sizes = [1, 128], strides = [1, 1]} : vector<2x128xf32> to vector<1x128xf32>
    %35 = arith.mulf %33, %33 : vector<1x128xf32>
    %36 = arith.subf %34, %35 : vector<1x128xf32>
    %c0_12 = arith.constant 0 : index
    %c0_13 = arith.constant 0 : index
    %37 = vector.load %arg5[%c0_12, %c0_13] : memref<2x128xf32, #tpu.memory_space<vmem>>, vector<1x128xf32>
    %cst_14 = arith.constant 9.99999974E-6 : f32
    %38 = vector.broadcast %cst_14 : f32 to vector<1x128xf32>
    %39 = arith.addf %36, %38 : vector<1x128xf32>
    %40 = math.rsqrt %39 : vector<1x128xf32>
    %41 = arith.mulf %37, %40 : vector<1x128xf32>
    %c1 = arith.constant 1 : index
    %c0_15 = arith.constant 0 : index
    %42 = vector.load %arg5[%c1, %c0_15] : memref<2x128xf32, #tpu.memory_space<vmem>>, vector<1x128xf32>
    %43 = arith.mulf %33, %41 : vector<1x128xf32>
    %44 = arith.subf %42, %43 : vector<1x128xf32>
    %45 = vector.broadcast %41 : vector<1x128xf32> to vector<32x128xf32>
    %46 = arith.mulf %0, %45 : vector<32x128xf32>
    %47 = vector.broadcast %44 : vector<1x128xf32> to vector<32x128xf32>
    %48 = arith.addf %46, %47 : vector<32x128xf32>
    %cst_16 = arith.constant 0.000000e+00 : f32
    %49 = vector.broadcast %cst_16 : f32 to vector<32x128xf32>
    %50 = arith.maximumf %48, %49 : vector<32x128xf32>
    %c1_i32_17 = arith.constant 1 : i32
    %51 = tpu.dynamic_rotate %50 by %c1_i32_17 dim 0 : vector<32x128xf32>, i32 -> vector<32x128xf32>
    %cst_18 = arith.constant 0.000000e+00 : f32
    %52 = vector.broadcast %cst_18 : f32 to vector<32x128xf32>
    %53 = arith.select %21, %51, %52 : vector<32x128xi1>, vector<32x128xf32>
    %c31_i32 = arith.constant 31 : i32
    %54 = tpu.dynamic_rotate %50 by %c31_i32 dim 0 : vector<32x128xf32>, i32 -> vector<32x128xf32>
    %cst_19 = arith.constant 0.000000e+00 : f32
    %55 = vector.broadcast %cst_19 : f32 to vector<32x128xf32>
    %56 = arith.select %23, %54, %55 : vector<32x128xi1>, vector<32x128xf32>
    %57 = arith.truncf %53 : vector<32x128xf32> to vector<32x128xbf16>
    %58 = arith.truncf %50 : vector<32x128xf32> to vector<32x128xbf16>
    %59 = arith.truncf %56 : vector<32x128xf32> to vector<32x128xbf16>
    %60 = tpu.concatenate %57, %58, %59 in 1 : vector<32x128xbf16>, vector<32x128xbf16>, vector<32x128xbf16> -> vector<32x384xbf16>
    %c0_20 = arith.constant 0 : index
    %c0_21 = arith.constant 0 : index
    %61 = vector.load %arg2[%c0_20, %c0_21] : memref<384x128xbf16, #tpu.memory_space<vmem>>, vector<384x128xbf16>
    %cst_22 = arith.constant dense<0.000000e+00> : vector<32x128xf32>
    %62 = tpu.matmul %60, %61, %cst_22 {dimension_numbers = #tpu.dot_dimension_numbers<[1], [0], [0], [1], [0, 0, 1, 1], [], []>} : vector<32x384xbf16>, vector<384x128xbf16>, vector<32x128xf32> -> vector<32x128xf32>
    %cst_23 = arith.constant dense<0.000000e+00> : vector<128xf32>
    %63 = vector.multi_reduction <add>, %62, %cst_23 [0] : vector<32x128xf32> to vector<128xf32>
    %64 = vector.shape_cast %63 : vector<128xf32> to vector<1x128xf32>
    %65 = arith.mulf %62, %62 : vector<32x128xf32>
    %cst_24 = arith.constant dense<0.000000e+00> : vector<128xf32>
    %66 = vector.multi_reduction <add>, %65, %cst_24 [0] : vector<32x128xf32> to vector<128xf32>
    %67 = vector.shape_cast %66 : vector<128xf32> to vector<1x128xf32>
    %68 = tpu.concatenate %64, %67 in 0 : vector<1x128xf32>, vector<1x128xf32> -> vector<2x128xf32>
    %cst_25 = arith.constant dense<0.000000e+00> : vector<2x128xf32>
    %69 = tpu.matmul %68, %2, %cst_25 {dimension_numbers = #tpu.dot_dimension_numbers<[1], [0], [0], [1], [0, 0, 1, 1], [], []>} : vector<2x128xf32>, vector<128x128xf32>, vector<2x128xf32> -> vector<2x128xf32>
    %cst_26 = arith.constant 0.001953125 : f32
    %70 = vector.broadcast %cst_26 : f32 to vector<2x128xf32>
    %71 = arith.mulf %69, %70 : vector<2x128xf32>
    %72 = vector.extract_strided_slice %71 {offsets = [0, 0], sizes = [1, 128], strides = [1, 1]} : vector<2x128xf32> to vector<1x128xf32>
    %73 = vector.extract_strided_slice %71 {offsets = [1, 0], sizes = [1, 128], strides = [1, 1]} : vector<2x128xf32> to vector<1x128xf32>
    %74 = arith.mulf %72, %72 : vector<1x128xf32>
    %75 = arith.subf %73, %74 : vector<1x128xf32>
    %c0_27 = arith.constant 0 : index
    %c0_28 = arith.constant 0 : index
    %76 = vector.load %arg6[%c0_27, %c0_28] : memref<2x128xf32, #tpu.memory_space<vmem>>, vector<1x128xf32>
    %cst_29 = arith.constant 9.99999974E-6 : f32
    %77 = vector.broadcast %cst_29 : f32 to vector<1x128xf32>
    %78 = arith.addf %75, %77 : vector<1x128xf32>
    %79 = math.rsqrt %78 : vector<1x128xf32>
    %80 = arith.mulf %76, %79 : vector<1x128xf32>
    %c1_30 = arith.constant 1 : index
    %c0_31 = arith.constant 0 : index
    %81 = vector.load %arg6[%c1_30, %c0_31] : memref<2x128xf32, #tpu.memory_space<vmem>>, vector<1x128xf32>
    %82 = arith.mulf %72, %80 : vector<1x128xf32>
    %83 = arith.subf %81, %82 : vector<1x128xf32>
    %84 = vector.broadcast %80 : vector<1x128xf32> to vector<32x128xf32>
    %85 = arith.mulf %62, %84 : vector<32x128xf32>
    %86 = vector.broadcast %83 : vector<1x128xf32> to vector<32x128xf32>
    %87 = arith.addf %85, %86 : vector<32x128xf32>
    %cst_32 = arith.constant 0.000000e+00 : f32
    %88 = vector.broadcast %cst_32 : f32 to vector<32x128xf32>
    %89 = arith.maximumf %87, %88 : vector<32x128xf32>
    %c1_i32_33 = arith.constant 1 : i32
    %90 = tpu.dynamic_rotate %89 by %c1_i32_33 dim 0 : vector<32x128xf32>, i32 -> vector<32x128xf32>
    %cst_34 = arith.constant 0.000000e+00 : f32
    %91 = vector.broadcast %cst_34 : f32 to vector<32x128xf32>
    %92 = arith.select %21, %90, %91 : vector<32x128xi1>, vector<32x128xf32>
    %c31_i32_35 = arith.constant 31 : i32
    %93 = tpu.dynamic_rotate %89 by %c31_i32_35 dim 0 : vector<32x128xf32>, i32 -> vector<32x128xf32>
    %cst_36 = arith.constant 0.000000e+00 : f32
    %94 = vector.broadcast %cst_36 : f32 to vector<32x128xf32>
    %95 = arith.select %23, %93, %94 : vector<32x128xi1>, vector<32x128xf32>
    %96 = arith.truncf %92 : vector<32x128xf32> to vector<32x128xbf16>
    %97 = arith.truncf %89 : vector<32x128xf32> to vector<32x128xbf16>
    %98 = arith.truncf %95 : vector<32x128xf32> to vector<32x128xbf16>
    %99 = tpu.concatenate %96, %97, %98 in 1 : vector<32x128xbf16>, vector<32x128xbf16>, vector<32x128xbf16> -> vector<32x384xbf16>
    %c0_37 = arith.constant 0 : index
    %c0_38 = arith.constant 0 : index
    %100 = vector.load %arg3[%c0_37, %c0_38] : memref<384x128xbf16, #tpu.memory_space<vmem>>, vector<384x128xbf16>
    %cst_39 = arith.constant dense<0.000000e+00> : vector<32x128xf32>
    %101 = tpu.matmul %99, %100, %cst_39 {dimension_numbers = #tpu.dot_dimension_numbers<[1], [0], [0], [1], [0, 0, 1, 1], [], []>} : vector<32x384xbf16>, vector<384x128xbf16>, vector<32x128xf32> -> vector<32x128xf32>
    %c0_40 = arith.constant 0 : index
    %102 = memref.load %arg7[%c0_40] : memref<2xf32, #tpu.memory_space<smem>>
    %c1_41 = arith.constant 1 : index
    %103 = memref.load %arg7[%c1_41] : memref<2xf32, #tpu.memory_space<smem>>
    %104 = vector.broadcast %102 : f32 to vector<32x128xf32>
    %105 = arith.mulf %104, %101 : vector<32x128xf32>
    %106 = arith.subf %0, %105 : vector<32x128xf32>
    %cst_42 = arith.constant 1.000000e+00 : f32
    %107 = arith.addf %cst_42, %103 : f32
    %108 = vector.broadcast %107 : f32 to vector<32x128xf32>
    %109 = arith.mulf %108, %106 : vector<32x128xf32>
    %110 = vector.broadcast %103 : f32 to vector<32x128xf32>
    %111 = arith.mulf %110, %1 : vector<32x128xf32>
    %112 = arith.subf %109, %111 : vector<32x128xf32>
    %c0_43 = arith.constant 0 : index
    %c0_44 = arith.constant 0 : index
    %113 = vector.load %arg9[%c0_43, %c0_44] : memref<32x128xf32, #tpu.memory_space<vmem>>, vector<32x128xf32>
    tpu.vector_store %arg9[%c0_43, %c0_44], %106 {strides = array<i32>} : memref<32x128xf32, #tpu.memory_space<vmem>>, vector<32x128xf32>,
    %c0_45 = arith.constant 0 : index
    %c0_46 = arith.constant 0 : index
    %114 = vector.load %arg8[%c0_45, %c0_46] : memref<32x128xf32, #tpu.memory_space<vmem>>, vector<32x128xf32>
    tpu.vector_store %arg8[%c0_45, %c0_46], %112 {strides = array<i32>} : memref<32x128xf32, #tpu.memory_space<vmem>>, vector<32x128xf32>,
    return
  }
}

</mosaic_0001>

<bundles_post_ra>
// kernel: basic_block_forward.1
= control target key start
LH: loop header
LB: loop body
LE: loop exit
PB: predicated region body
PF: predicated region fallthrough
CT: control target
= control target key end

     0   :  { %15 = vsyncpa [#allocation3], 0  ;;  %s1997_s0 = inlined_call_operand.vmem [shape: f32[32,128], index: 0, kind: input, shape index: {}]   ;;  %s1998_s1 = inlined_call_operand.vmem [shape: f32[32,128], index: 1, kind: input, shape index: {}]   ;;  %s1999_s2 = inlined_call_operand.vmem [shape: bf16[384,128], index: 2, kind: input, shape index: {}]   ;;  %s2000_s3 = inlined_call_operand.vmem [shape: bf16[384,128], index: 3, kind: input, shape index: {}]   ;;  %s2001_s4 = inlined_call_operand.vmem [shape: f32[128,128], index: 4, kind: input, shape index: {}]   ;;  %s2002_s5 = inlined_call_operand.vmem [shape: f32[2,128], index: 5, kind: input, shape index: {}]   ;;  %s2003_s6 = inlined_call_operand.vmem [shape: f32[2,128], index: 6, kind: input, shape index: {}]   ;;  %s2004_s7 = inlined_call_operand.vmem [shape: f32[2], index: 7, kind: input, shape index: {}]   ;;  %s2005_s8 = inlined_call_operand.vmem [shape: f32[32,128], index: 8, kind: output, shape index: {0}]   ;;  %s2006_s9 = inlined_call_operand.vmem [shape: f32[32,128], index: 9, kind: output, shape index: {1}]  }
   0x1   :  { %s36_s11 = sshll.u32 %s2004_s7, 4  ;;  %s37_s11 = int_to_ptr.vmem [resolvable:$true] %s36_s11 }
   0x2   :  { %s1472_s12 = scalar_lea.vmem %s37_s11, 16  ;;  %p1477_p1 = scmp.lt.s32.totalorder %s37_s11, %s37_s11 }
   0x3   :  { %p1473_p0 = scmp.ne.s32.totalorder %s37_s11, %s1472_s12  ;;  %p1478_p2 = scmp.lt.s32.totalorder %s1472_s12, %s1472_s12 }
   0x5   :  { %p1479_p3 = por %p1478_p2, %p1477_p1 }
   0x7   :  { %p1480_p4 = pnand %p1479_p3, %p1473_p0 }
   0x9   :  { %1483 = shalt.err (!%p1480_p4)
}
   0xa   :  { %s1486_s13 = smov [#allocation2]  }
   0xb   :  { %39 = dma.vmem_to_smem %s37_s11, 16, %s1486_s13, [#allocation3]  }
   0xc   :  { %1484 = dma.done.wait [#allocation3], 16  }
   0xd   :  { %1485 = vsyncadd [#allocation3], 4294967280 }
   0xe   :  { %43 = sfence }
   0xf   :  { %v53_v0 = vld [vmem:[%s2001_s4] sm:$0xff]  ;;  %v54_v1 = vld [vmem:[%s2001_s4 + $0x8] sm:$0xff]  ;;  %v55_v2 = vld [vmem:[%s2001_s4 + $0x10] sm:$0xff]  ;;  %v1487_v3 = vmov 0.0|0.0   ;;  %vm1488_vm0 = vmmov 0   ;;  %v1489_v6 = vmov 0.0  }
  0x10   :  { %1367 = vmatprep.subr.bf16.mxu0 %v1487_v3  ;;  %v1554_v4 = vpack.c.bf16 %v54_v1, %v53_v0  ;;  %v56_v5 = vld [vmem:[%s2001_s4 + $0x18] sm:$0xff]  ;;  %1289 = vmatprep.mubr.msk.f32.mxu0 %vm1488_vm0, %v1489_v6  ;;  %v57_v8 = vld [vmem:[%s2001_s4 + $0x20] sm:$0xff]  ;;  %v58_v9 = vld [vmem:[%s2001_s4 + $0x28] sm:$0xff]  ;;  %vm152_vm1 = vcmask 1040384   ;;  %vm1490_vm7 = vmmov 1   ;;  %s1146_s10 = sld [smem:[#allocation2 + $0x1]] }
  0x11   :  { %v1562_v7 = vpack.c.bf16 %v56_v5, %v55_v2  ;;  %v1574_v10 = vld [vmem:[%s1997_s0] sm:$0xff]  ;;  %v1579_v11 = vld [vmem:[%s1997_s0 + $0x8] sm:$0xff]  ;;  %v59_v12 = vld [vmem:[%s2001_s4 + $0x30] sm:$0xff]  ;;  %v1604_v19 = vpack.c.bf16 %v58_v9, %v57_v8 }
  0x12   :  { %1369 = vmatpush3.bf16.msra.mxu0 %v1554_v4  ;;  %v60_v13 = vld [vmem:[%s2001_s4 + $0x38] sm:$0xff]  ;;  %v1590_v14 = vld [vmem:[%s1997_s0 + $0x10] sm:$0xff]  ;;  %v130_v16 = vadd.f32 %v1579_v11, %v1574_v10  ;;  %v139_v17 = vmul.f32 %v1574_v10, %v1574_v10  ;;  %v140_v18 = vmul.f32 %v1579_v11, %v1579_v11  ;;  %v61_v24 = vld [vmem:[%s2001_s4 + $0x40] sm:$0xff] }
  0x13   :  { %1370 = vmatprep.subr.bf16.mxu0 %v1487_v3  ;;  %v1595_v15 = vld [vmem:[%s1997_s0 + $0x18] sm:$0xff]  ;;  %v141_v20 = vmul.f32 %v1590_v14, %v1590_v14  ;;  %v1617_v27 = vpack.c.bf16 %v60_v13, %v59_v12  ;;  %v62_v28 = vld [vmem:[%s2001_s4 + $0x48] sm:$0xff]  ;;  %v63_v31 = vld [vmem:[%s2001_s4 + $0x50] sm:$0xff] }
  0x14   :  { %v131_v21 = vadd.f32 %v130_v16, %v1590_v14  ;;  %v142_v22 = vmul.f32 %v1595_v15, %v1595_v15  ;;  %v143_v23 = vadd.f32 %v140_v18, %v139_v17  ;;  %v1627_v34 = vpack.c.bf16 %v62_v28, %v61_v24  ;;  %v64_v35 = vld [vmem:[%s2001_s4 + $0x58] sm:$0xff]  ;;  %v65_v38 = vld [vmem:[%s2001_s4 + $0x60] sm:$0xff]  ;;  %v66_v42 = vld [vmem:[%s2001_s4 + $0x68] sm:$0xff] }
  0x15   :  { %v1637_v41 = vpack.c.bf16 %v64_v35, %v63_v31  ;;  %v67_v44 = vld [vmem:[%s2001_s4 + $0x70] sm:$0xff]  ;;  %v68_v45 = vld [vmem:[%s2001_s4 + $0x78] sm:$0xff]  ;;  %v1650_v48 = vpack.c.bf16 %v66_v42, %v65_v38  ;;  %v1420_v53 = vld [vmem:[%s1999_s2 + $0x40] sm:$0xff]  }
  0x16   :  { %1372 = vmatpush3.bf16.msra.mxu0 %v1562_v7  ;;  %v132_v25 = vadd.f32 %v131_v21, %v1595_v15  ;;  %v144_v26 = vadd.f32 %v143_v23, %v141_v20  ;;  %v1654_v49 = vpack.c.bf16 %v68_v45, %v67_v44  ;;  %v1421_v54 = vld [vmem:[%s1999_s2] sm:$0xff]   ;;  %1164 = vmatprep.subr.bf16.mxu1 %v1420_v53  ;;  %v1423_v56 = vld [vmem:[%s1999_s2 + $0x48] sm:$0xff]   ;;  %v1426_v59 = vld [vmem:[%s1999_s2 + $0x50] sm:$0xff]  }
  0x17   :  { %1373 = vmatprep.subr.bf16.mxu0 %v1487_v3  ;;  %v1422_v55 = vld [vmem:[%s1999_s2 + $0x80] sm:$0xff]   ;;  %1165 = vmatpush3.bf16.msra.mxu1 %v1421_v54  ;;  %v1424_v57 = vld [vmem:[%s1999_s2 + $0x8] sm:$0xff]   ;;  %v1427_v60 = vld [vmem:[%s1999_s2 + $0x10] sm:$0xff]  }
  0x18   :  { %v133_v29 = vrot.slane %v132_v25, 4  ;;  %v145_v30 = vadd.f32 %v144_v26, %v142_v22  ;;  %v1425_v58 = vld [vmem:[%s1999_s2 + $0x88] sm:$0xff]   ;;  %1166 = vmatprep.subr.bf16.mxu1 %v1423_v56  ;;  %v1428_v61 = vld [vmem:[%s1999_s2 + $0x90] sm:$0xff]   ;;  %v1429_v62 = vld [vmem:[%s1999_s2 + $0x58] sm:$0xff]  }
  0x19   :  { %v1430_v63 = vld [vmem:[%s1999_s2 + $0x18] sm:$0xff]   ;;  %v1432_v1 = vld [vmem:[%s1999_s2 + $0x60] sm:$0xff]   ;;  %v1435_v8 = vld [vmem:[%s1999_s2 + $0x68] sm:$0xff]  }
  0x1a   :  { %1375 = vmatpush3.bf16.msra.mxu0 %v1604_v19  ;;  %v134_v32 = vadd.f32 %v133_v29, %v132_v25  ;;  %v146_v33 = vrot.slane %v145_v30, 4  ;;  %v1431_v0 = vld [vmem:[%s1999_s2 + $0x98] sm:$0xff]   ;;  %v1433_v2 = vld [vmem:[%s1999_s2 + $0x20] sm:$0xff]   ;;  %v1436_v9 = vld [vmem:[%s1999_s2 + $0x28] sm:$0xff]  }
  0x1b   :  { %1376 = vmatprep.subr.bf16.mxu0 %v1487_v3  ;;  %1167 = vmatpush3.bf16.msra.mxu1 %v1424_v57  ;;  %v1434_v5 = vld [vmem:[%s1999_s2 + $0xa0] sm:$0xff]   ;;  %v1437_v12 = vld [vmem:[%s1999_s2 + $0xa8] sm:$0xff]   ;;  %v1438_v13 = vld [vmem:[%s1999_s2 + $0x70] sm:$0xff]  }
  0x1c   :  { %v135_v36 = vrot.slane %v134_v32, 2  ;;  %v147_v37 = vadd.f32 %v146_v33, %v145_v30  ;;  %1168 = vmatprep.subr.bf16.mxu1 %v1426_v59  ;;  %v1439_v16 = vld [vmem:[%s1999_s2 + $0x30] sm:$0xff]   ;;  %v1441_v18 = vld [vmem:[%s1999_s2 + $0x78] sm:$0xff]   ;;  %v69_v30 = vlaneseq  ;;  %v230_v33 = vld [vmem:[%s2002_s5] sm:$0x1] }
  0x1d   :  { %v1440_v17 = vld [vmem:[%s1999_s2 + $0xb0] sm:$0xff]   ;;  %v1442_v20 = vld [vmem:[%s1999_s2 + $0x38] sm:$0xff]   ;;  %v237_v38 = vld [vmem:[%s2002_s5 + $0x1] sm:$0x1]  ;;  %s1042_s5 = sadd.f32 1.0, %s1146_s10 }
  0x1e   :  { %1378 = vmatpush3.bf16.msra.mxu0 %v1617_v27  ;;  %v136_v39 = vadd.f32 %v135_v36, %v134_v32  ;;  %v148_v40 = vrot.slane %v147_v37, 2  ;;  %v1443_v21 = vld [vmem:[%s1999_s2 + $0xb8] sm:$0xff]   ;;  %v1732_v31 = vshrl.u32 %v69_v30, 7 }
  0x1f   :  { %1379 = vmatprep.subr.bf16.mxu0 %v1487_v3  ;;  %1169 = vmatpush3.bf16.msra.mxu1 %v1427_v60 }
  0x20   :  { %v149_v43 = vadd.f32 %v148_v40, %v147_v37  ;;  %v137_v46 = vrot.slane %v136_v39, 1  ;;  %1170 = vmatprep.subr.bf16.mxu1 %v1429_v62  ;;  %v1738_v36 = vsub.s32 0, %v1732_v31  ;;  %v71_v42 = vadd.s32 8, %v1732_v31 }
  0x21   :  { %v73_v45 = vadd.s32 24, %v1732_v31  ;;  %vm264_vm2 = vcmp.lt.s32.totalorder %v1732_v31, 1  ;;  %vm277_vm3 = vcmp.lt.s32.totalorder %v1732_v31, 7 }
  0x22   :  { %1381 = vmatpush3.bf16.msra.mxu0 %v1627_v34  ;;  %v150_v47 = vrot.slane %v149_v43, 1  ;;  %v138_v50 = vadd.f32 %v137_v46, %v136_v39  ;;  %v85_v53 = vand.u32 15, %v71_v42 }
  0x23   :  { %1382 = vmatprep.subr.bf16.mxu0 %v1487_v3  ;;  %1171 = vmatpush3.bf16.msra.mxu1 %v1430_v63 }
  0x24   :  { %v151_v51 = vadd.f32 %v150_v47, %v149_v43  ;;  %1172 = vmatprep.subr.bf16.mxu1 %v1432_v1  ;;  %vm1754_vm5 = vcmp.ne.s32.totalorder %v85_v53, 15 }
  0x25   :  { %vm1779_vm9 = vmpackc.low %vm1754_vm5, %vm1490_vm7 }
  0x26   :  { %1384 = vmatpush3.bf16.msra.mxu0 %v1637_v41  ;;  %v153_v52 = vsel %vm152_vm1, %v138_v50, %v151_v51 }
  0x27   :  { %1385 = vmatprep.subr.bf16.mxu0 %v1487_v3  ;;  %1173 = vmatpush3.bf16.msra.mxu1 %v1433_v2 }
  0x28   :  { %1174 = vmatprep.subr.bf16.mxu1 %v1435_v8 }
  0x2a   :  { %1387 = vmatpush3.bf16.msra.mxu0 %v1650_v48 }
  0x2b   :  { %1388 = vmatprep.subr.bf16.mxu0 %v1487_v3  ;;  %1175 = vmatpush3.bf16.msra.mxu1 %v1436_v9 }
  0x2c   :  { %1176 = vmatprep.subr.bf16.mxu1 %v1438_v13 }
  0x2e   :  { %1390 = vmatpush3.bf16.msra.mxu0 %v1654_v49 }
  0x2f   :  { %1292 = vmatprep.subr.bf16.mxu0 %v1422_v55  ;;  %1177 = vmatpush3.bf16.msra.mxu1 %v1439_v16 }
  0x30   :  { %1178 = vmatprep.subr.bf16.mxu1 %v1441_v18 }
  0x31   :  { %1290 = vmatmul.mubr.f32.vlgmr.msra.gmra.mrb[0].mxu0 %v153_v52  ;;  %v78_v52 = vand.u32 15, %v1732_v31 }
  0x32   :  { %1293 = vmatpush3.bf16.msra.mxu0 %v1422_v55 }
  0x33   :  { %1294 = vmatprep.subr.bf16.mxu0 %v1425_v58  ;;  %1179 = vmatpush3.bf16.msra.mxu1 %v1442_v20  ;;  %vm122_vm4 = vcmp.ne.s32.totalorder %v78_v52, 0 }
  0x34   :  { %1391 = vmatprep.subr.bf16.mxu1 %v1487_v3  ;;  %vm1766_vm8 = vmpackc.low %vm1490_vm7, %vm122_vm4 }
  0x36   :  { %1295 = vmatpush3.bf16.msra.mxu0 %v1425_v58  ;;  %v99_v58 = vand.u32 15, %v73_v45 }
  0x37   :  { %1296 = vmatprep.subr.bf16.mxu0 %v1428_v61 }
  0x38   :  { %vm1759_vm6 = vcmp.ne.s32.totalorder %v99_v58, 15 }
  0x39   :  { %vm1790_vm10 = vmpackc.low %vm1759_vm6, %vm1490_vm7 }
  0x3a   :  { %1297 = vmatpush3.bf16.msra.mxu0 %v1428_v61 }
  0x3b   :  { %1298 = vmatprep.subr.bf16.mxu0 %v1431_v0 }
  0x3e   :  { %1299 = vmatpush3.bf16.msra.mxu0 %v1431_v0  ;;  %v72_v0 = vadd.s32 16, %v1732_v31  ;;  %v49_v31 = vld [vmem:[%s1998_s1] sm:$0xff] }
  0x3f   :  { %1300 = vmatprep.subr.bf16.mxu0 %v1434_v5 }
  0x42   :  { %1301 = vmatpush3.bf16.msra.mxu0 %v1434_v5 }
  0x43   :  { %1302 = vmatprep.subr.bf16.mxu0 %v1437_v12 }
  0x46   :  { %1303 = vmatpush3.bf16.msra.mxu0 %v1437_v12 }
  0x47   :  { %1304 = vmatprep.subr.bf16.mxu0 %v1440_v17 }
  0x4a   :  { %1305 = vmatpush3.bf16.msra.mxu0 %v1440_v17 }
  0x4b   :  { %1306 = vmatprep.subr.bf16.mxu0 %v1443_v21 }
  0x4e   :  { %1307 = vmatpush3.bf16.msra.mxu0 %v1443_v21 }
 0x104   :  { %v220_v22 = vpop.f32.mrb[0].mxu0 }
 0x105   :  { %v224_v23 = vmul.f32 0.001953125, %v220_v22  ;;  %v1291_v24 = vpop.f32.mrb[1].mxu0 }
 0x107   :  { %v225_v25 = vmul.f32 %v224_v23, %v224_v23 }
 0x109   :  { %v227_v26 = vrot.slane %v225_v25, 7  ;;  %v92_v25 = vand.u32 15, %v72_v0 }
 0x10b   :  { %v229_v28 = vsub.f32 %v224_v23, %v227_v26  ;;  %vm124_vm11 = vcmp.ne.s32.totalorder %v92_v25, 0  ;;  %v1444_v25 = vld [vmem:[%s2000_s3 + $0x40] sm:$0xff]  }
 0x10c   :  { %vm1807_vm12 = vmpackc.low %vm1490_vm7, %vm124_vm11  ;;  %1219 = vmatprep.subr.bf16.mxu0 %v1444_v25 }
 0x10d   :  { %v231_v29 = vadd.f32 1e-05, %v229_v28 }
 0x10f   :  { %1468 = vrsqrt.f32 %v231_v29 }
 0x119   :  { %v1469_v32 = vpop.eup %1468 }
 0x11a   :  { %v234_v35 = vrot.slane %v1469_v32, 1 }
 0x11c   :  { %v236_v37 = vmul.f32 %v234_v35, %v230_v33 }
 0x11e   :  { %v238_v39 = vmul.f32 %v236_v37, %v224_v23  ;;  %v243_v40 = vrot.slane %v236_v37, %v1738_v36 }
 0x120   :  { %v239_v43 = vsub.f32 %v237_v38, %v238_v39  ;;  %v246_v44 = vmul.f32 %v243_v40, %v1590_v14  ;;  %v247_v46 = vmul.f32 %v243_v40, %v1595_v15  ;;  %v244_v50 = vmul.f32 %v243_v40, %v1574_v10 }
 0x121   :  { %v245_v51 = vmul.f32 %v243_v40, %v1579_v11  ;;  %v1048_v40 = vstv %s1146_s10 }
 0x122   :  { %v251_v47 = vrot.slane %v239_v43, %v1738_v36 }
 0x124   :  { %v254_v54 = vadd.f32 %v251_v47, %v246_v44  ;;  %v255_v55 = vadd.f32 %v251_v47, %v247_v46  ;;  %v252_v56 = vadd.f32 %v251_v47, %v244_v50  ;;  %v253_v57 = vadd.f32 %v251_v47, %v245_v51 }
 0x126   :  { %v256_v59 = vmax.f32 %v252_v56, 0.0  ;;  %v257_v60 = vmax.f32 %v253_v57, 0.0  ;;  %v259_v61 = vmax.f32 %v255_v55, 0.0  ;;  %v258_v62 = vmax.f32 %v254_v54, 0.0 }
 0x128   :  { %v260_v1 = vrot.slane %v256_v59, 7  ;;  %v261_v2 = vrot.slane %v257_v60, 7  ;;  %v273_v5 = vrot.slane %v256_v59, 1  ;;  %v274_v8 = vrot.slane %v257_v60, 1 }
 0x129   :  { %v288_v9 = vpack.c.bf16 %v257_v60, %v256_v59  ;;  %v263_v12 = vrot.slane %v259_v61, 7  ;;  %v275_v13 = vrot.slane %v258_v62, 1  ;;  %v276_v21 = vrot.slane %v259_v61, 1 }
 0x12a   :  { %v267_v17 = vsel %vm264_vm2, %v260_v1, %v261_v2  ;;  %v280_v20 = vsel %vm277_vm3, %v273_v5, %v274_v8  ;;  %v289_v33 = vpack.c.bf16 %v259_v61, %v258_v62  ;;  %v262_v37 = vrot.slane %v258_v62, 7 }
 0x12b   :  { %516 = vmatprep.mubr.bf16.mxu1 %v288_v9  ;;  %v268_v22 = vsel %vm264_vm2, %v263_v12, %v260_v1  ;;  %v279_v23 = vsel %vm277_vm3, %v274_v8, %v275_v13  ;;  %v278_v29 = vsel %vm277_vm3, %v275_v13, %v276_v21  ;;  %v281_v30 = vsel %vm277_vm3, %v276_v21, %v273_v5 }
 0x12c   :  { %v1099_v26 = vpack.c.bf16 %v267_v17, %v268_v22  ;;  %v1105_v28 = vpack.c.bf16 %v279_v23, %v280_v20  ;;  %v1108_v35 = vpack.c.bf16 %v281_v30, %v278_v29  ;;  %v265_v38 = vsel %vm264_vm2, %v262_v37, %v263_v12  ;;  %v1447_v29 = vld [vmem:[%s2000_s3 + $0x48] sm:$0xff]  }
 0x12d   :  { %v266_v39 = vsel %vm264_vm2, %v261_v2, %v262_v37  ;;  %v1448_v30 = vld [vmem:[%s2000_s3 + $0x8] sm:$0xff]   ;;  %v1451_v37 = vld [vmem:[%s2000_s3 + $0x10] sm:$0xff]  }
 0x12e   :  { %1100 = vmatmul.mubr.msk.bf16.vlgmr.msra.gmra.mrb[0].mxu1 %vm1766_vm8, %v1099_v26  ;;  %1308 = vmatprep.mubr.msk.bf16.mxu0 %vm1779_vm9, %v1105_v28  ;;  %v1102_v42 = vpack.c.bf16 %v265_v38, %v266_v39  ;;  %v1445_v26 = vld [vmem:[%s2000_s3] sm:$0xff]   ;;  %v1452_v38 = vld [vmem:[%s2000_s3 + $0x90] sm:$0xff]   ;;  %v1453_v39 = vld [vmem:[%s2000_s3 + $0x58] sm:$0xff]  }
 0x12f   :  { %524 = vmatprep.mubr.bf16.mxu1 %v289_v33  ;;  %1309 = vmatmul.mubr.msk.bf16.vlgmr.msra.gmra.mrb[4].mxu0 %vm1790_vm10, %v1108_v35  ;;  %v1446_v28 = vld [vmem:[%s2000_s3 + $0x80] sm:$0xff]   ;;  %v1449_v33 = vld [vmem:[%s2000_s3 + $0x88] sm:$0xff]   ;;  %v1450_v35 = vld [vmem:[%s2000_s3 + $0x50] sm:$0xff]  }
 0x130   :  { %1393 = vmatpush3.bf16.msra.mxu1 %v1554_v4  ;;  %1220 = vmatpush3.bf16.msra.mxu0 %v1445_v26 }
 0x131   :  { %1394 = vmatprep.subr.bf16.mxu1 %v1487_v3  ;;  %1221 = vmatprep.subr.bf16.mxu0 %v1447_v29 }
 0x134   :  { %1396 = vmatpush3.bf16.msra.mxu1 %v1562_v7  ;;  %1222 = vmatpush3.bf16.msra.mxu0 %v1448_v30 }
 0x135   :  { %1397 = vmatprep.subr.bf16.mxu1 %v1487_v3  ;;  %1223 = vmatprep.subr.bf16.mxu0 %v1450_v35 }
 0x136   :  { %1103 = vmatmul.mubr.msk.bf16.gmra.mrb[4].mxu1 %vm1807_vm12, %v1102_v42  ;;  %v1454_v42 = vld [vmem:[%s2000_s3 + $0x18] sm:$0xff]  }
 0x137   :  { %1344 = vmatprep.mubr.msk.f32.mxu1 %vm1488_vm0, %v1489_v6 }
 0x138   :  { %1399 = vmatpush3.bf16.msra.mxu1 %v1604_v19  ;;  %1224 = vmatpush3.bf16.msra.mxu0 %v1451_v37 }
 0x139   :  { %1400 = vmatprep.subr.bf16.mxu1 %v1487_v3  ;;  %1225 = vmatprep.subr.bf16.mxu0 %v1453_v39 }
 0x13c   :  { %1402 = vmatpush3.bf16.msra.mxu1 %v1617_v27  ;;  %1226 = vmatpush3.bf16.msra.mxu0 %v1454_v42 }
 0x13d   :  { %1403 = vmatprep.subr.bf16.mxu1 %v1487_v3 }
 0x140   :  { %1405 = vmatpush3.bf16.msra.mxu1 %v1627_v34 }
 0x141   :  { %1406 = vmatprep.subr.bf16.mxu1 %v1487_v3 }
 0x144   :  { %1408 = vmatpush3.bf16.msra.mxu1 %v1637_v41 }
 0x145   :  { %1409 = vmatprep.subr.bf16.mxu1 %v1487_v3 }
 0x148   :  { %1411 = vmatpush3.bf16.msra.mxu1 %v1650_v48 }
 0x149   :  { %1412 = vmatprep.subr.bf16.mxu1 %v1487_v3 }
 0x14c   :  { %1414 = vmatpush3.bf16.msra.mxu1 %v1654_v49 }
 0x14d   :  { %1347 = vmatprep.subr.bf16.mxu1 %v1446_v28 }
 0x201   :  { %v1180_v4 = vpop.f32.mrb[0].mxu1 }
 0x202   :  { %v1181_v6 = vpop.f32.mrb[1].mxu1  ;;  %v1310_v7 = vpop.f32.mrb[4].mxu0 }
 0x203   :  { %v1182_v19 = vadd.f32 %v1181_v6, %v1180_v4  ;;  %v1183_v27 = vpop.f32.mrb[2].mxu1  ;;  %v567_v43 = vpop.f32.mrb[5].mxu0  ;;  %v1455_v4 = vld [vmem:[%s2000_s3 + $0x98] sm:$0xff]   ;;  %v1456_v6 = vld [vmem:[%s2000_s3 + $0x60] sm:$0xff]  }
 0x204   :  { %v1184_v44 = vpop.f32.mrb[3].mxu1  ;;  %v1311_v34 = vpop.f32.mrb[6].mxu0  ;;  %1227 = vmatprep.subr.bf16.mxu0 %v1456_v6 }
 0x205   :  { %v1828_v45 = vadd.f32 %v1182_v19, %v567_v43  ;;  %v1185_v46 = vadd.f32 %v1184_v44, %v1183_v27  ;;  %v570_v41 = vpop.f32.mrb[7].mxu0  ;;  %v1458_v19 = vld [vmem:[%s2000_s3 + $0xa0] sm:$0xff]   ;;  %v1459_v27 = vld [vmem:[%s2000_s3 + $0x68] sm:$0xff]  }
 0x206   :  { %v1460_v43 = vld [vmem:[%s2000_s3 + $0x28] sm:$0xff]  }
 0x207   :  { %v1830_v47 = vadd.f32 %v1185_v46, %v570_v41  ;;  %v591_v53 = vmul.f32 %v1828_v45, %v1828_v45  ;;  %v1461_v44 = vld [vmem:[%s2000_s3 + $0xa8] sm:$0xff]   ;;  %v1463_v46 = vld [vmem:[%s2000_s3 + $0x30] sm:$0xff]  }
 0x208   :  { %v1464_v41 = vld [vmem:[%s2000_s3 + $0xb0] sm:$0xff]  }
 0x209   :  { %v1186_v50 = vpop.f32.mrb[4].mxu1  ;;  %v592_v3 = vmul.f32 %v1830_v47, %v1830_v47  ;;  %v582_v54 = vadd.f32 %v1830_v47, %v1828_v45 }
 0x20a   :  { %v1187_v48 = vpop.f32.mrb[5].mxu1 }
 0x20b   :  { %v1188_v49 = vadd.f32 %v1187_v48, %v1186_v50  ;;  %v1189_v51 = vpop.f32.mrb[6].mxu1  ;;  %v595_v57 = vadd.f32 %v592_v3, %v591_v53  ;;  %v1465_v50 = vld [vmem:[%s2000_s3 + $0x78] sm:$0xff]  }
 0x20c   :  { %v1190_v52 = vpop.f32.mrb[7].mxu1  ;;  %v1466_v48 = vld [vmem:[%s2000_s3 + $0x38] sm:$0xff]  }
 0x20d   :  { %v1838_v55 = vadd.f32 %v1310_v7, %v1188_v49  ;;  %v1191_v56 = vadd.f32 %v1190_v52, %v1189_v51  ;;  %v1457_v7 = vld [vmem:[%s2000_s3 + $0x20] sm:$0xff]   ;;  %v1467_v3 = vld [vmem:[%s2000_s3 + $0xb8] sm:$0xff]  }
 0x20e   :  { %1228 = vmatpush3.bf16.msra.mxu0 %v1457_v7 }
 0x20f   :  { %v583_v58 = vadd.f32 %v582_v54, %v1838_v55  ;;  %v593_v59 = vmul.f32 %v1838_v55, %v1838_v55  ;;  %v1843_v60 = vadd.f32 %v1311_v34, %v1191_v56  ;;  %1229 = vmatprep.subr.bf16.mxu0 %v1459_v27  ;;  %v1462_v34 = vld [vmem:[%s2000_s3 + $0x70] sm:$0xff]  }
 0x211   :  { %v596_v61 = vadd.f32 %v595_v57, %v593_v59  ;;  %v584_v62 = vadd.f32 %v583_v58, %v1843_v60  ;;  %v594_v63 = vmul.f32 %v1843_v60, %v1843_v60  ;;  %v681_v59 = vld [vmem:[%s2003_s6] sm:$0x1] }
 0x212   :  { %1230 = vmatpush3.bf16.msra.mxu0 %v1460_v43 }
 0x213   :  { %v585_v0 = vrot.slane %v584_v62, 4  ;;  %v597_v1 = vadd.f32 %v596_v61, %v594_v63  ;;  %1231 = vmatprep.subr.bf16.mxu0 %v1462_v34  ;;  %v688_v63 = vld [vmem:[%s2003_s6 + $0x1] sm:$0x1]  ;;  %s1031_s6 = sld [smem:[#allocation2]] }
 0x215   :  { %v586_v2 = vadd.f32 %v585_v0, %v584_v62  ;;  %v598_v5 = vrot.slane %v597_v1, 4 }
 0x216   :  { %1232 = vmatpush3.bf16.msra.mxu0 %v1463_v46 }
 0x217   :  { %v587_v8 = vrot.slane %v586_v2, 2  ;;  %v599_v9 = vadd.f32 %v598_v5, %v597_v1  ;;  %1233 = vmatprep.subr.bf16.mxu0 %v1465_v50 }
 0x219   :  { %v588_v12 = vadd.f32 %v587_v8, %v586_v2  ;;  %v600_v13 = vrot.slane %v599_v9, 2  ;;  %v1033_v32 = vstv %s1031_s6 }
 0x21a   :  { %1234 = vmatpush3.bf16.msra.mxu0 %v1466_v48 }
 0x21b   :  { %v589_v16 = vrot.slane %v588_v12, 1  ;;  %v601_v17 = vadd.f32 %v600_v13, %v599_v9 }
 0x21d   :  { %v602_v20 = vrot.slane %v601_v17, 1  ;;  %v590_v21 = vadd.f32 %v589_v16, %v588_v12 }
 0x21f   :  { %v603_v22 = vadd.f32 %v602_v20, %v601_v17 }
 0x221   :  { %v604_v23 = vsel %vm152_vm1, %v590_v21, %v603_v22 }
 0x222   :  { %1345 = vmatmul.mubr.f32.vlgmr.msra.gmra.mrb[8].mxu1 %v604_v23 }
 0x223   :  { %1348 = vmatpush3.bf16.msra.mxu1 %v1446_v28 }
 0x224   :  { %1349 = vmatprep.subr.bf16.mxu1 %v1449_v33 }
 0x227   :  { %1350 = vmatpush3.bf16.msra.mxu1 %v1449_v33 }
 0x228   :  { %1351 = vmatprep.subr.bf16.mxu1 %v1452_v38 }
 0x22b   :  { %1352 = vmatpush3.bf16.msra.mxu1 %v1452_v38 }
 0x22c   :  { %1353 = vmatprep.subr.bf16.mxu1 %v1455_v4 }
 0x22f   :  { %1354 = vmatpush3.bf16.msra.mxu1 %v1455_v4 }
 0x230   :  { %1355 = vmatprep.subr.bf16.mxu1 %v1458_v19 }
 0x233   :  { %1356 = vmatpush3.bf16.msra.mxu1 %v1458_v19 }
 0x234   :  { %1357 = vmatprep.subr.bf16.mxu1 %v1461_v44 }
 0x237   :  { %1358 = vmatpush3.bf16.msra.mxu1 %v1461_v44 }
 0x238   :  { %1359 = vmatprep.subr.bf16.mxu1 %v1464_v41 }
 0x23b   :  { %1360 = vmatpush3.bf16.msra.mxu1 %v1464_v41 }
 0x23c   :  { %1361 = vmatprep.subr.bf16.mxu1 %v1467_v3 }
 0x23f   :  { %1362 = vmatpush3.bf16.msra.mxu1 %v1467_v3 }
 0x2f5   :  { %v671_v49 = vpop.f32.mrb[8].mxu1 }
 0x2f6   :  { %v675_v51 = vmul.f32 0.001953125, %v671_v49  ;;  %v1346_v52 = vpop.f32.mrb[9].mxu1 }
 0x2f8   :  { %v676_v53 = vmul.f32 %v675_v51, %v675_v51 }
 0x2fa   :  { %v678_v54 = vrot.slane %v676_v53, 7 }
 0x2fc   :  { %v680_v56 = vsub.f32 %v675_v51, %v678_v54 }
 0x2fe   :  { %v682_v57 = vadd.f32 1e-05, %v680_v56 }
 0x300   :  { %1470 = vrsqrt.f32 %v682_v57  ;;  %v1043_v57 = vstv %s1042_s5 }
 0x30a   :  { %v1471_v58 = vpop.eup %1470 }
 0x30b   :  { %v685_v61 = vrot.slane %v1471_v58, 1  ;;  %v50_v58 = vld [vmem:[%s1998_s1 + $0x8] sm:$0xff] }
 0x30d   :  { %v687_v62 = vmul.f32 %v685_v61, %v681_v59  ;;  %v1049_v61 = vmul.f32 %v1048_v40, %v49_v31 }
 0x30f   :  { %v689_v0 = vmul.f32 %v687_v62, %v675_v51  ;;  %v694_v1 = vrot.slane %v687_v62, %v1738_v36 }
 0x311   :  { %v690_v2 = vsub.f32 %v688_v63, %v689_v0  ;;  %v697_v5 = vmul.f32 %v694_v1, %v1838_v55  ;;  %v698_v8 = vmul.f32 %v694_v1, %v1843_v60  ;;  %v695_v12 = vmul.f32 %v694_v1, %v1828_v45 }
 0x312   :  { %v696_v13 = vmul.f32 %v694_v1, %v1830_v47 }
 0x313   :  { %v702_v9 = vrot.slane %v690_v2, %v1738_v36 }
 0x315   :  { %v705_v16 = vadd.f32 %v702_v9, %v697_v5  ;;  %v706_v17 = vadd.f32 %v702_v9, %v698_v8  ;;  %v703_v20 = vadd.f32 %v702_v9, %v695_v12  ;;  %v704_v21 = vadd.f32 %v702_v9, %v696_v13 }
 0x316   :  { %v1050_v5 = vmul.f32 %v1048_v40, %v50_v58 }
 0x317   :  { %v710_v22 = vmax.f32 %v706_v17, 0.0  ;;  %v707_v23 = vmax.f32 %v703_v20, 0.0  ;;  %v708_v25 = vmax.f32 %v704_v21, 0.0  ;;  %v709_v26 = vmax.f32 %v705_v16, 0.0  ;;  %v51_v20 = vld [vmem:[%s1998_s1 + $0x10] sm:$0xff] }
 0x319   :  { %v711_v28 = vrot.slane %v707_v23, 7  ;;  %v712_v29 = vrot.slane %v708_v25, 7  ;;  %v737_v30 = vpack.c.bf16 %v708_v25, %v707_v23  ;;  %v714_v55 = vrot.slane %v710_v22, 7 }
 0x31a   :  { %v723_v33 = vrot.slane %v707_v23, 1  ;;  %v724_v60 = vrot.slane %v708_v25, 1  ;;  %v725_v35 = vrot.slane %v709_v26, 1  ;;  %v726_v47 = vrot.slane %v710_v22, 1  ;;  %v52_v23 = vld [vmem:[%s1998_s1 + $0x18] sm:$0xff] }
 0x31b   :  { %965 = vmatprep.mubr.bf16.mxu0 %v737_v30  ;;  %v717_v36 = vsel %vm264_vm2, %v711_v28, %v712_v29  ;;  %v718_v45 = vsel %vm264_vm2, %v714_v55, %v711_v28  ;;  %v738_v42 = vpack.c.bf16 %v710_v22, %v709_v26  ;;  %v713_v19 = vrot.slane %v709_v26, 7 }
 0x31c   :  { %v1135_v37 = vpack.c.bf16 %v717_v36, %v718_v45  ;;  %v728_v38 = vsel %vm277_vm3, %v724_v60, %v725_v35  ;;  %v729_v39 = vsel %vm277_vm3, %v723_v33, %v724_v60  ;;  %v727_v6 = vsel %vm277_vm3, %v725_v35, %v726_v47 }
 0x31d   :  { %v1141_v4 = vpack.c.bf16 %v728_v38, %v729_v39  ;;  %v730_v7 = vsel %vm277_vm3, %v726_v47, %v723_v33  ;;  %v715_v43 = vsel %vm264_vm2, %v713_v19, %v714_v55  ;;  %v716_v44 = vsel %vm264_vm2, %v712_v29, %v713_v19 }
 0x31e   :  { %1136 = vmatmul.mubr.msk.bf16.vlgmr.msra.gmra.mrb[8].mxu0 %vm1766_vm8, %v1135_v37  ;;  %v1144_v27 = vpack.c.bf16 %v730_v7, %v727_v6  ;;  %v1138_v34 = vpack.c.bf16 %v715_v43, %v716_v44  ;;  %v1051_v26 = vmul.f32 %v1048_v40, %v51_v20  ;;  %v1052_v55 = vmul.f32 %v1048_v40, %v52_v23 }
 0x31f   :  { %1363 = vmatprep.mubr.msk.bf16.mxu1 %vm1779_vm9, %v1141_v4  ;;  %973 = vmatprep.mubr.bf16.mxu0 %v738_v42 }
 0x320   :  { %1364 = vmatmul.mubr.msk.bf16.vlgmr.msra.gmra.mrb[12].mxu1 %vm1790_vm10, %v1144_v27 }
 0x326   :  { %1139 = vmatmul.mubr.msk.bf16.gmra.mrb[12].mxu0 %vm1807_vm12, %v1138_v34 }
 0x3f1   :  { %v1235_v18 = vpop.f32.mrb[8].mxu0 }
 0x3f2   :  { %v1236_v46 = vpop.f32.mrb[9].mxu0 }
 0x3f3   :  { %v1237_v24 = vadd.f32 %v1236_v46, %v1235_v18  ;;  %v1365_v41 = vpop.f32.mrb[12].mxu1  ;;  %v1238_v50 = vpop.f32.mrb[10].mxu0 }
 0x3f4   :  { %v1016_v48 = vpop.f32.mrb[13].mxu1  ;;  %v1239_v3 = vpop.f32.mrb[11].mxu0 }
 0x3f5   :  { %v1017_v49 = vadd.f32 %v1237_v24, %v1016_v48  ;;  %v1240_v51 = vadd.f32 %v1239_v3, %v1238_v50  ;;  %v1366_v52 = vpop.f32.mrb[14].mxu1 }
 0x3f6   :  { %v1019_v53 = vpop.f32.mrb[15].mxu1 }
 0x3f7   :  { %v1034_v54 = vmul.f32 %v1033_v32, %v1017_v49  ;;  %v1020_v56 = vadd.f32 %v1240_v51, %v1019_v53 }
 0x3f9   :  { %v1038_v59 = vsub.f32 %v1574_v10, %v1034_v54  ;;  %v1035_v62 = vmul.f32 %v1033_v32, %v1020_v56  ;;  %v1241_v63 = vpop.f32.mrb[12].mxu0 }
 0x3fa   :  { %v1242_v0 = vpop.f32.mrb[13].mxu0 }
 0x3fb   :  { %v1044_v1 = vmul.f32 %v1043_v57, %v1038_v59  ;;  %1057 = vst [vmem:[%s2006_s9] sm:$0xff] %v1038_v59  ;;  %v1039_v2 = vsub.f32 %v1579_v11, %v1035_v62  ;;  %v1243_v8 = vadd.f32 %v1242_v0, %v1241_v63  ;;  %v1244_v9 = vpop.f32.mrb[14].mxu0 }
 0x3fc   :  { %v1245_v12 = vpop.f32.mrb[15].mxu0 }
 0x3fd   :  { %v1053_v13 = vsub.f32 %v1044_v1, %v1049_v61  ;;  %v1045_v16 = vmul.f32 %v1043_v57, %v1039_v2  ;;  %1058 = vst [vmem:[%s2006_s9 + $0x8] sm:$0xff] %v1039_v2  ;;  %v1025_v10 = vadd.f32 %v1365_v41, %v1243_v8  ;;  %v1246_v17 = vadd.f32 %v1245_v12, %v1244_v9 }
 0x3ff   :  { %1061 = vst [vmem:[%s2005_s8] sm:$0xff] %v1053_v13  ;;  %v1054_v11 = vsub.f32 %v1045_v16, %v1050_v5  ;;  %v1036_v21 = vmul.f32 %v1033_v32, %v1025_v10  ;;  %v1028_v22 = vadd.f32 %v1366_v52, %v1246_v17 }
 0x401   :  { %1062 = vst [vmem:[%s2005_s8 + $0x8] sm:$0xff] %v1054_v11  ;;  %v1040_v25 = vsub.f32 %v1590_v14, %v1036_v21  ;;  %v1037_v28 = vmul.f32 %v1033_v32, %v1028_v22 }
 0x403   :  { %v1046_v29 = vmul.f32 %v1043_v57, %v1040_v25  ;;  %1059 = vst [vmem:[%s2006_s9 + $0x10] sm:$0xff] %v1040_v25  ;;  %v1041_v30 = vsub.f32 %v1595_v15, %v1037_v28 }
 0x405   :  { %v1055_v33 = vsub.f32 %v1046_v29, %v1051_v26  ;;  %v1047_v60 = vmul.f32 %v1043_v57, %v1041_v30  ;;  %1060 = vst [vmem:[%s2006_s9 + $0x18] sm:$0xff] %v1041_v30 }
 0x407   :  { %1063 = vst [vmem:[%s2005_s8 + $0x10] sm:$0xff] %v1055_v33  ;;  %v1056_v14 = vsub.f32 %v1047_v60, %v1052_v55 }
 0x409   :  { %1064 = vst [vmem:[%s2005_s8 + $0x18] sm:$0xff] %v1056_v14 }
 0x40a   :  { %1073 = vsyncpa [#allocation3], 1 }

</bundles_post_ra>
